<compile_context>
chip_gen: v7x
topology: tpu7x:2x2x1
jax: 0.10.0
libtpu: 0.0.40
codegen_flags: <defaults>
</compile_context>

<pallas_src>
import math
import functools

import jax
import jax.numpy as jnp
from jax import lax
from jax.experimental import pallas as pl
from jax.experimental.pallas import tpu as pltpu


# ---------------------------------------------------------------------------
# helpers
# ---------------------------------------------------------------------------

def _round_up(x: int, m: int) -> int:
    return ((x + m - 1) // m) * m


def _sublane_tile(dtype) -> int:
    # 8 sublanes for 4-byte dtypes, 16 for bf16, 32 for int8/fp8.
    return max(8, 32 // jnp.dtype(dtype).itemsize)


def _vmem_capacity_bytes() -> int:
    # v7x: 64 MiB / TC; v5e/v6e: 128 MiB.  Fall back to the smallest (v7x).
    try:
        return int(pltpu.get_tpu_info().vmem_capacity_bytes)
    except Exception:
        return 64 * 1024 * 1024


_MAX_SMEM_IDS = 32768   # max scalar-prefetched ids per pallas_call (<=128 KiB SMEM)


def _pick_tile(n: int, emb_size: int, itemsize: int, dtype,
               tokens_per_step, max_t: int) -> int:
    """Tokens per grid step: sublane-aligned, ~2 MiB output tile, >=2 steps."""
    sub = _sublane_tile(dtype)
    if tokens_per_step is not None:
        return _round_up(int(tokens_per_step), sub)
    target_tile_bytes = 2 << 20
    T = _round_up(max(target_tile_bytes // max(emb_size * itemsize, 1), 1), sub)
    T = min(T, max_t)
    n_r = _round_up(max(n, 1), sub)
    T = min(T, n_r)
    if n_r >= 2 * sub:
        # Ensure at least two grid steps so v7x's two TensorCores both get work.
        T = min(T, _round_up(-(-max(n, 1) // 2), sub))
    return max(T, sub)


# ---------------------------------------------------------------------------
# Fast path: table resident in VMEM, one-hot MXU gather
# ---------------------------------------------------------------------------

def _embed_onehot_kernel(ids_ref, table_ref, out_ref, *, scale, vocab_size):
    """One dense one-hot matmul per tile: (T, vocab) @ (vocab, emb) on the MXU."""
    ids = ids_ref[...]                                            # (T, 1) int32
    iota = lax.broadcasted_iota(jnp.int32, (ids.shape[0], vocab_size), 1)
    onehot = (ids == iota).astype(table_ref.dtype)                # (T, vocab)
    acc = jnp.dot(onehot, table_ref[...],
                  preferred_element_type=jnp.float32)             # (T, emb) f32
    out_ref[...] = (acc * scale).astype(out_ref.dtype)            # one dense store


# ---------------------------------------------------------------------------
# Fallback path: table in HBM, manual row gathers, double-buffered across steps
# ---------------------------------------------------------------------------

def _embed_hbm_gather_kernel(ids_ref, table_hbm_ref, out_ref, rows_ref, sems,
                             *, scale, tokens_per_step):
    T = tokens_per_step
    i = pl.program_id(0)
    n_steps = pl.num_programs(0)
    slot = i % 2

    def issue(step, slot_):
        # All SMEM id reads happen here, before any DMA wait in this body.
        base = step * T
        for t in range(T):
            tok = ids_ref[base + t]                               # SMEM scalar read
            pltpu.make_async_copy(
                table_hbm_ref.at[pl.ds(tok, 1), :],               # dynamic HBM row
                rows_ref.at[slot_, pl.ds(t, 1), :],               # VMEM slot row
                sems.at[slot_],
            ).start()

    # Prologue: fetch this (first) step's rows.  Requires "arbitrary" semantics
    # so the whole grid runs on one core and later steps see these signals.
    @pl.when(i == 0)
    def _():
        issue(0, 0)

    # Prefetch next step's rows into the other slot; overlaps with this step's
    # waits, compute and output writeback.
    @pl.when(i + 1 < n_steps)
    def _():
        issue(i + 1, 1 - slot)

    # Drain this slot's T row copies (issued on the previous step / prologue).
    # The wait descriptor only needs matching shape + semaphore, so use a fixed
    # row-0 source: no id re-reads after waits.
    for t in range(T):
        pltpu.make_async_copy(
            table_hbm_ref.at[pl.ds(0, 1), :],
            rows_ref.at[slot, pl.ds(t, 1), :],
            sems.at[slot],
        ).wait()

    # One dense (T, emb) scale + store; output writeback is pipelined by Pallas.
    out_ref[...] = (rows_ref[slot] * scale).astype(out_ref.dtype)


def _hbm_gather_call(flat_ids, emb_table, T, scale, vmem_cap):
    vocab_size, emb_size = emb_table.shape
    dtype = emb_table.dtype
    itemsize = jnp.dtype(dtype).itemsize
    n_pad = flat_ids.shape[0]                       # multiple of T
    out_tile_bytes = T * emb_size * itemsize
    need = 2 * T * emb_size * itemsize + 2 * out_tile_bytes + (2 << 20)

    kernel = functools.partial(_embed_hbm_gather_kernel, scale=scale,
                               tokens_per_step=T)
    return pl.pallas_call(
        kernel,
        out_shape=jax.ShapeDtypeStruct((n_pad, emb_size), dtype),
        grid_spec=pltpu.PrefetchScalarGridSpec(
            num_scalar_prefetch=1,                   # ids -> SMEM (DMA addressing)
            grid=(n_pad // T,),
            in_specs=[pl.BlockSpec(memory_space=pl.ANY)],   # raw HBM table ref
            out_specs=pl.BlockSpec((T, emb_size), lambda i, ids: (i, 0)),
            scratch_shapes=[
                pltpu.VMEM((2, T, emb_size), dtype),        # double-buffered rows
                pltpu.SemaphoreType.DMA((2,)),               # one DMA sem per slot
            ],
        ),
        compiler_params=pltpu.CompilerParams(
            # Keep the whole grid on one core: cross-step prefetch state
            # (prologue at step 0) is not megacore-safe under "parallel".
            dimension_semantics=("arbitrary",),
            vmem_limit_bytes=int(min(need + (8 << 20), int(0.9 * vmem_cap))),
        ),
    )(flat_ids, emb_table)


# ---------------------------------------------------------------------------
# wrapper
# ---------------------------------------------------------------------------

def _token_embedding_flat(flat_ids, emb_table, force_hbm_gather, tokens_per_step,
                          onehot_max_vocab):
    vocab_size, emb_size = emb_table.shape
    dtype = emb_table.dtype
    itemsize = jnp.dtype(dtype).itemsize
    n = flat_ids.shape[0]
    scale = math.sqrt(float(emb_size))
    vmem_cap = _vmem_capacity_bytes()
    table_bytes = vocab_size * emb_size * itemsize

    # Decide the path with a worst-case (T=512) working-set estimate so the
    # tile choice can then depend on the path.
    wc_out = 2 * 512 * emb_size * itemsize
    wc_onehot = 512 * vocab_size * itemsize
    fast_need_wc = 2 * table_bytes + wc_out + wc_onehot + (2 << 20)
    table_in_vmem = (not force_hbm_gather
                     and vocab_size <= onehot_max_vocab
                     and fast_need_wc <= int(0.75 * vmem_cap))

    max_t = 512 if table_in_vmem else 256   # cap unrolled DMA count on HBM path
    T = _pick_tile(n, emb_size, itemsize, dtype, tokens_per_step, max_t)
    n_pad = _round_up(max(n, 1), T)
    if n_pad != n:
        flat_ids = jnp.pad(flat_ids, (0, n_pad - n))   # pad with id 0 (valid row)

    out_tile_bytes = T * emb_size * itemsize

    if table_in_vmem:
        fast_need = (2 * table_bytes + 2 * out_tile_bytes
                     + T * vocab_size * itemsize + 2 * T * 4 + (1 << 20))
        kernel = functools.partial(_embed_onehot_kernel, scale=scale,
                                   vocab_size=vocab_size)
        ids_2d = flat_ids.reshape(n_pad, 1)
        out_flat = pl.pallas_call(
            kernel,
            out_shape=jax.ShapeDtypeStruct((n_pad, emb_size), dtype),
            grid_spec=pltpu.PrefetchScalarGridSpec(
                num_scalar_prefetch=0,
                grid=(n_pad // T,),
                in_specs=[
                    # Per-tile ids (VMEM), no whole-vector SMEM prefetch needed.
                    pl.BlockSpec((T, 1), lambda i: (i, 0)),
                    # Whole table, constant block index -> fetched once, reused.
                    pl.BlockSpec((vocab_size, emb_size), lambda i: (0, 0)),
                ],
                out_specs=pl.BlockSpec((T, emb_size), lambda i: (i, 0)),
            ),
            compiler_params=pltpu.CompilerParams(
                # Tiles are independent -> shard across TCs on v7x.
                dimension_semantics=("parallel",),
                vmem_limit_bytes=int(min(fast_need + (8 << 20),
                                         int(0.9 * vmem_cap))),
            ),
        )(ids_2d, emb_table)
    else:
        # Chunk so the scalar-prefetched id vector stays small in SMEM.
        if n_pad > _MAX_SMEM_IDS:
            chunk = (_MAX_SMEM_IDS // T) * T
            outs = [_hbm_gather_call(flat_ids[s:s + chunk], emb_table, T, scale,
                                     vmem_cap)
                    for s in range(0, n_pad, chunk)]
            out_flat = jnp.concatenate(outs, axis=0)
        else:
            out_flat = _hbm_gather_call(flat_ids, emb_table, T, scale, vmem_cap)

    return out_flat[:n] if n_pad != n else out_flat


def token_embedding(tokens: jax.Array, emb_table: jax.Array, *,
                    force_hbm_gather: bool = False,
                    tokens_per_step: int | None = None,
                    onehot_max_vocab: int = 4096) -> jax.Array:
    """Pallas equivalent of TokenEmbedding.forward."""
    vocab_size, emb_size = emb_table.shape
    orig_shape = tokens.shape
    # Clip ids -> deterministic behavior for out-of-range tokens (no OOB reads).
    flat_ids = jnp.clip(tokens.reshape(-1).astype(jnp.int32), 0, vocab_size - 1)
    out_flat = _token_embedding_flat(flat_ids, emb_table, force_hbm_gather,
                                     tokens_per_step, onehot_max_vocab)
    return out_flat.reshape(orig_shape + (emb_size,))


# ---------------------------------------------------------------------------
# demo / self-test
# ---------------------------------------------------------------------------

if __name__ == "__main__":
    vocab_size = 64
    emb_size = 128
    seq_len = 8
    batch = 2

    key = jax.random.PRNGKey(0)
    k_emb, k_tok = jax.random.split(key)

    # Deterministic "parameters" for nn.Embedding(vocab_size, emb_size).
    emb_table = jax.random.normal(k_emb, (vocab_size, emb_size), dtype=jnp.float32)
    # Token ids, shape (seq, batch), analogous to `tokens.long()`.
    tokens = jax.random.randint(k_tok, (seq_len, batch), 0, vocab_size,
                                dtype=jnp.int32)

    ref = jnp.take(emb_table, tokens.reshape(-1), axis=0).reshape(
        seq_len, batch, emb_size) * math.sqrt(emb_size)

    # Fast path: VMEM-resident table, one-hot MXU gather.
    out = jax.block_until_ready(token_embedding(tokens, emb_table))
    assert out.shape == (seq_len, batch, emb_size)
    assert jnp.allclose(out, ref, atol=1e-4, rtol=1e-5), "one-hot path mismatch"

    # Fallback path: double-buffered manual HBM row-gather DMAs.
    out_hbm = jax.block_until_ready(
        token_embedding(tokens, emb_table, force_hbm_gather=True))
    assert jnp.allclose(out_hbm, ref, atol=1e-4, rtol=1e-5), "HBM path mismatch"

    # Padding path: token count not a multiple of the tile.
    tokens_odd = jax.random.randint(jax.random.PRNGKey(1), (5, 3), 0, vocab_size,
                                    dtype=jnp.int32)
    ref_odd = jnp.take(emb_table, tokens_odd.reshape(-1), axis=0).reshape(
        5, 3, emb_size) * math.sqrt(emb_size)
    out_odd = jax.block_until_ready(token_embedding(tokens_odd, emb_table))
    assert jnp.allclose(out_odd, ref_odd, atol=1e-4, rtol=1e-5), "padding mismatch"

    print("KERNEL_OK")
</pallas_src>

<mosaic_0001>
module attributes {stable_mosaic.version = 11 : i64} {
  func.func @_embed_onehot_kernel(%arg0: i32, %arg1: memref<8x1xi32, #tpu.memory_space<vmem>>, %arg2: memref<64x128xf32, #tpu.memory_space<vmem>>, %arg3: memref<8x128xf32, #tpu.memory_space<vmem>>) attributes {dimension_semantics = [#tpu.dimension_semantics<parallel>], iteration_bounds = array<i64: 2>, scalar_prefetch = 0 : i64, scratch_operands = 0 : i64, tpu.core_type = #tpu.core_type<tc>, window_params = [{transform_indices = @transform_0, window_bounds = array<i64: 8, 1>}, {pipeline_mode = #tpu.pipeline_mode<synchronous>, transform_indices = @transform_1, window_bounds = array<i64: 64, 128>}, {transform_indices = @transform_2, window_bounds = array<i64: 8, 128>}]} {
    %c0 = arith.constant 0 : index
    %c0_0 = arith.constant 0 : index
    %0 = vector.load %arg1[%c0, %c0_0] : memref<8x1xi32, #tpu.memory_space<vmem>>, vector<8x1xi32>
    %1 = tpu.iota {dimensions = array<i32: 1>} : vector<8x64xi32>
    %2 = vector.broadcast %0 : vector<8x1xi32> to vector<8x64xi32>
    %3 = arith.cmpi eq, %2, %1 : vector<8x64xi32>
    %4 = arith.extui %3 : vector<8x64xi1> to vector<8x64xi32>
    %5 = arith.sitofp %4 : vector<8x64xi32> to vector<8x64xf32>
    %c0_1 = arith.constant 0 : index
    %c0_2 = arith.constant 0 : index
    %6 = vector.load %arg2[%c0_1, %c0_2] : memref<64x128xf32, #tpu.memory_space<vmem>>, vector<64x128xf32>
    %cst = arith.constant dense<0.000000e+00> : vector<8x128xf32>
    %7 = tpu.matmul %5, %6, %cst {dimension_numbers = #tpu.dot_dimension_numbers<[1], [0], [0], [1], [0, 0, 1, 1], [], []>} : vector<8x64xf32>, vector<64x128xf32>, vector<8x128xf32> -> vector<8x128xf32>
    %cst_3 = arith.constant 11.3137083 : f32
    %8 = vector.broadcast %cst_3 : f32 to vector<8x128xf32>
    %9 = arith.mulf %7, %8 : vector<8x128xf32>
    %c0_4 = arith.constant 0 : index
    %c0_5 = arith.constant 0 : index
    %10 = vector.load %arg3[%c0_4, %c0_5] : memref<8x128xf32, #tpu.memory_space<vmem>>, vector<8x128xf32>
    tpu.vector_store %arg3[%c0_4, %c0_5], %9 {strides = array<i32>} : memref<8x128xf32, #tpu.memory_space<vmem>>, vector<8x128xf32>,
    return
  }
  func.func @transform_0(%arg0: i32) -> (i32, i32) {
    %c0_i32 = arith.constant 0 : i32
    %c0_i32_0 = arith.constant 0 : i32
    return %arg0, %c0_i32 : i32, i32
  }
  func.func @transform_1(%arg0: i32) -> (i32, i32) {
    %c0_i32 = arith.constant 0 : i32
    %c0_i32_0 = arith.constant 0 : i32
    %c0_i32_1 = arith.constant 0 : i32
    return %c0_i32, %c0_i32_0 : i32, i32
  }
  func.func @transform_2(%arg0: i32) -> (i32, i32) {
    %c0_i32 = arith.constant 0 : i32
    %c0_i32_0 = arith.constant 0 : i32
    return %arg0, %c0_i32 : i32, i32
  }
}

</mosaic_0001>

<bundles_post_ra>
// kernel: tpu_custom_call.1
= control target key start
LH: loop header
LB: loop body
LE: loop exit
PB: predicated region body
PF: predicated region fallthrough
CT: control target
= control target key end

     0   :  { %7 = vsyncpa [#allocation3], 0  ;;  %s697_s0 = inlined_call_operand.vmem [shape: s32[16,1], index: 0, kind: input, shape index: {}]   ;;  %s698_s1 = inlined_call_operand.hbm [shape: f32[64,128], index: 1, kind: input, shape index: {}]   ;;  %s699_s2 = inlined_call_operand.hbm [shape: f32[16,128], index: 2, kind: output, shape index: {}]  }
   0x1   :  { %8 = vsyncpa [#allocation4], 0 }
   0x2   :  { %10 = vsyncpa [#allocation4 + $0x1], 0  ;;  %s562_s9 = smov 0   ;;  %s564_s10 = smov 0  }
   0x3   :  { %s566_s11 = smov 0   ;;  %s568_s12 = smov 0  }
   0x4 LB: > { %s583_s13 = sadd.s32 4294967295, %s537_s12   ;;  %s332_s14 = sadd.s32 4294967294, %s537_s12   ;;  %s537_s12 = sphi %s568_s12, %s715_s12   ;;  %s533_s11 = sphi %s566_s11, %s714_s11   ;;  %s529_s10 = sphi %s564_s10, %s713_s10   ;;  %s525_s9 = sphi %s562_s9, %s712_s9  }
   0x5   : > { %s587_s15 = sadd.s32 1, %s537_s12   ;;  %s70_s16 = sadd.s32 1, %s533_s11 }
   0x6   : > { %s67_s17 = ssub.s32 %s537_s12, %s587_s15  ;;  %p80_p0 = scmp.ne.s32.totalorder %s533_s11, %s529_s10 }
   0x7   : > { %p68_p1 = scmp.eq.s32.totalorder %s67_s17, 0  ;;  %p81_p2 = scmp.eq.s32.totalorder %s583_s13, 1 }
   0x8   : > { %p86_p3 = scmp.ne.s32.totalorder %s529_s10, %s525_s9  ;;  %p87_p4 = scmp.eq.s32.totalorder %s332_s14, 1 }
   0x9   : > { %s598_s18 = scalar_select %p68_p1, %s533_s11, %s70_s16  }
   0xa   : > { %p600_p5 = por %p81_p2, %p80_p0  ;;  %p604_p6 = por %p87_p4, %p86_p3 }
   0xb   : > { %p333_p7 = scmp.ge.s32.totalorder %s537_s12, 1  ;;  %p94_p8 = scmp.lt.s32.totalorder %s537_s12, 3 }
   0xc   : > { %s703_s19 = scalar_select %p600_p5, 1, 0 }
   0xd   : > { %s704_s20 = scalar_select %p604_p6, 1, 0 }
   0xe   : > { %p700_p9 = scmp.eq.s32.totalorder %s583_s13, 0  ;;  %p611_p10 = pnand %p333_p7, %p94_p8 }
   0xf   : > { %s539_s22 = smov [#allocation2]   ;;  %s443_s27 = scalar_lea.hbm %s698_s1, 1024 }
  0x10   : > { %s705_s21 = scalar_select %p611_p10, 1, 0 }
  0x11   : > { %s106_s23 = sshll.u32 %s539_s22, 4  ;;  %p392_p11 = pneg %p611_p10  ;;  %s107_s23 = int_to_ptr.vmem [resolvable:$true] %s106_s23 }
  0x12   : > { %p444_p13 = scmp.ne.s32.totalorder %s698_s1, %s443_s27  ;;  %p450_p3 = scmp.lt.u32.totalorder %s443_s27, %s698_s1 }
  0x13   : > { %p619_p12 = pnand %p700_p9, %p392_p11 }
  0x15   : > { %p445_p0 = pneg %p619_p12 }
  0x17   : > { %p446_p1 = pnand %p445_p0, %p444_p13 }
  0x19   : > { %p447_p2 = pneg %p446_p1 }
  0x1b   : > { %p452_p4 = pnand %p450_p3, %p447_p2 }
  0x1d   : > { %455 = shalt.err (!%p452_p4)
}
  0x1e   : > { %s456_s4 = scalar_lea.vmem %s107_s23, 1024  ;;  %p464_p9 = scmp.lt.s32.totalorder %s107_s23, %s107_s23 }
  0x1f   : > { %p457_p7 = scmp.ne.s32.totalorder %s107_s23, %s456_s4  ;;  %p465_p6 = scmp.lt.s32.totalorder %s456_s4, %s456_s4 }
  0x21   : > { %p459_p8 = pnand %p457_p7, %p445_p0  ;;  %p466_p5 = por %p465_p6, %p464_p9 }
  0x23   : > { %p460_p11 = pneg %p459_p8 }
  0x25   : > { %p467_p10 = pnand %p466_p5, %p460_p11 }
  0x27   : > { %470 = shalt.err (!%p467_p10)
}
  0x28   : > { %s540_s5 = smov 128   ;;  %s541_s6 = smov 8  }
  0x29   : > { %395 = dma.hbm_to_vmem [thread:$0]  (!%p619_p12), %s698_s1, 1024, %s107_s23, [#allocation3], %s540_s5, %s540_s5, %s541_s6  }
  0x2a   : > { %p707_p13 = scmp.ne.s32.totalorder %s705_s21, 0 }
  0x2b   : > { %p708_p1 = scmp.eq.s32.totalorder (!%p707_p13), %s583_s13, 0 }
  0x2c   : > { %129 = sbr.rel (%p707_p13) target bundleno = 417 (0x1a1), region = 28 }
  0x33   : > { %516 = dma.done.wait (%p708_p1), [#allocation3], 1024   ;;  %p709_p0 = pmov %p708_p1 }
  0x34   : > { %p150_p5 = scmp.lt.s32.totalorder %s583_s13, 1  ;;  %v542_v0 = vmov 0   ;;  %v543_v1 = vmov 0.0|0.0   ;;  %v163_v3 = vld [vmem:[#allocation2] sm:$0xff]  ;;  %v164_v4 = vld [vmem:[#allocation2 + $0x8] sm:$0xff]  ;;  %v165_v6 = vld [vmem:[#allocation2 + $0x10] sm:$0xff]  ;;  %v155_v16 = vlaneseq }
  0x35   : > { %518 = vsyncadd (%p709_p0), [#allocation3], 4294966272  ;;  %442 = vset.pattern.permute.xlu0 %v542_v0  ;;  %374 = vmatprep.subr.bf16.mxu0 %v543_v1  ;;  %v375_v5 = vpack.c.bf16 %v164_v4, %v163_v3  ;;  %v166_v7 = vld [vmem:[#allocation2 + $0x18] sm:$0xff]  ;;  %vm544_vm0 = vmmov 0   ;;  %v545_v8 = vmov 0.0   ;;  %v167_v10 = vld [vmem:[#allocation2 + $0x20] sm:$0xff] }
  0x36   : > { %s151_s14 = scalar_select %p150_p5, %s583_s13, 1  ;;  %371 = vmatprep.mubr.msk.f32.mxu0 %vm544_vm0, %v545_v8  ;;  %v378_v9 = vpack.c.bf16 %v166_v7, %v165_v6  ;;  %v168_v11 = vld [vmem:[#allocation2 + $0x28] sm:$0xff]  ;;  %v169_v13 = vld [vmem:[#allocation2 + $0x30] sm:$0xff]  ;;  %v170_v14 = vld [vmem:[#allocation2 + $0x38] sm:$0xff]  ;;  %v156_v17 = vand.u32 127, %v155_v16  ;;  %vm171_vm1 = vcmask 523264  }
  0x37   : > { %376 = vmatpush3.bf16.msra.mxu0 %v375_v5  ;;  %v381_v12 = vpack.c.bf16 %v168_v11, %v167_v10  ;;  %v384_v15 = vpack.c.bf16 %v170_v14, %v169_v13  ;;  %s147_s23 = sand.u32 1, %s529_s10   ;;  %s343_s25 = sshll.u32 %s583_s13, 7 }
  0x38   : > { %s339_s16 = sshll.u32 %s151_s14, 3  ;;  %377 = vmatprep.subr.bf16.mxu0 %v543_v1  ;;  %s338_s24 = sshll.u32 %s147_s23, 3 }
  0x39   : > { %s153_s21 = scalar_lea.vmem %s697_s0, %s339_s16  ;;  %s149_s26 = scalar_lea.vmem [#allocation5], %s338_s24 }
  0x3a   : > { %v154_v2 = vld [vmem:[%s153_s21] sm:$0xff]  ;;  %s261_s27 = sshll.u32 %s149_s26, 4  ;;  %s655_s30 = scalar_lea.hbm %s699_s2, %s343_s25  ;;  %s657_s27 = int_to_ptr.vmem [resolvable:$true] %s261_s27 }
  0x3b   : > { %158 = vperm.xlu0 %442, %v154_v2   ;;  %379 = vmatpush3.bf16.msra.mxu0 %v378_v9  ;;  %s248_s3 = scalar_lea.sflag [#allocation4], %s147_s23  ;;  %s471_s4 = scalar_lea.vmem %s657_s27, 128 }
  0x3c   : > { %380 = vmatprep.subr.bf16.mxu0 %v543_v1  ;;  %p472_p6 = scmp.ne.s32.totalorder %s657_s27, %s471_s4  ;;  %p710_p9 = scmp.ne.s32.totalorder %s703_s19, 0 }
  0x3d   : > { %s546_s13 = smov [#allocation5]  }
  0x3e   : > { %p473_p10 = pnand %p472_p6, %p710_p9  ;;  %s475_s5 = sshll.u32 %s546_s13, 4  ;;  %s476_s5 = int_to_ptr.vmem [resolvable:$false] %s475_s5 }
  0x3f   : > { %382 = vmatpush3.bf16.msra.mxu0 %v381_v12  ;;  %s477_s6 = scalar_lea.vmem %s476_s5, 256  ;;  %p478_p2 = scmp.lt.s32.totalorder %s657_s27, %s476_s5 }
  0x40   : > { %383 = vmatprep.subr.bf16.mxu0 %v543_v1  ;;  %p474_p12 = pneg %p473_p10  ;;  %p479_p3 = scmp.lt.s32.totalorder %s477_s6, %s471_s4 }
  0x42   : > { %p480_p4 = por %p479_p3, %p478_p2 }
  0x43   : > { %385 = vmatpush3.bf16.msra.mxu0 %v384_v15 }
  0x44   : > { %p481_p7 = pnand %p480_p4, %p474_p12 }
  0xba   : > { %v159_v18 = vpop.permute.xlu0 %158 }
  0xbb   : > { %vm160_vm2 = vcmp.eq.s32.totalorder %v159_v18, %v156_v17 }
  0xbc   : > { %v340_v19 = vsel %vm160_vm2, 1.0, %v545_v8 }
  0xbd   : > { %372 = vmatmul.mubr.msk.f32.vlgmr.msra.gmra.mrb[0].mxu0 %vm171_vm1, %v340_v19 }
 0x190   : > { %v241_v20 = vpop.f32.mrb[0].mxu0 }
 0x191   : > { %v245_v21 = vmul.f32 11.313708, %v241_v20  ;;  %v373_v22 = vpop.f32.mrb[1].mxu0 }
 0x193   : > { %246 = vst [vmem:[%s149_s26] sm:$0xff] %v245_v21 }
 0x194   : > { %484 = shalt.err (!%p481_p7)
}
 0x195   : > { %s485_s7 = scalar_lea.hbm %s655_s30, 128  ;;  %s489_s16 = scalar_lea.hbm %s699_s2, 256 }
 0x196   : > { %p486_p8 = scmp.ne.s32.totalorder %s655_s30, %s485_s7  ;;  %p490_p1 = scmp.lt.u32.totalorder %s655_s30, %s699_s2 }
 0x197   : > { %p491_p0 = scmp.lt.u32.totalorder %s489_s16, %s485_s7  ;;  %p493_p6 = scmp.lt.u32.totalorder %s485_s7, %s655_s30 }
 0x198   : > { %p487_p11 = pnand %p486_p8, %p710_p9 }
 0x199   : > { %p492_p5 = por %p491_p0, %p490_p1 }
 0x19a   : > { %p488_p13 = pneg %p487_p11 }
 0x19b   : > { %p494_p10 = por %p493_p6, %p492_p5 }
 0x19d   : > { %p495_p12 = pnand %p494_p10, %p488_p13 }
 0x19f   : > { %498 = shalt.err (!%p495_p12)
}
 0x1a0   : > { %390 = dma.vmem_to_hbm [thread:$0]  (%p710_p9), %s657_s27, 128, %s655_s30, %s248_s3  }
 0x1a1 PF: > { %p402_p2 = scmp.ge.s32.totalorder %s537_s12, 2  ;;  %s273_s21 = sand.u32 1, %s525_s9  }
 0x1a2   : > { %p711_p3 = scmp.ne.s32.totalorder %s704_s20, 0  ;;  %s274_s23 = scalar_lea.sflag [#allocation4], %s273_s21 }
 0x1a4   : > { %p397_p4 = pnand %p402_p2, %p711_p3 }
 0x1a6   : > { %520 = dma.done.wait (!%p397_p4), %s274_s23, 128  }
 0x1a7   : > { %522 = vsyncadd (!%p397_p4), %s274_s23, 4294967168  ;;  %p13_p7 = scmp.ge.s32.totalorder %s587_s15, 4   ;;  %s712_s9 = smov %s529_s10 }
 0x1a8   : > { %s713_s10 = smov %s533_s11  ;;  %s714_s11 = smov %s598_s18 }
 0x1a9   : > { %s715_s12 = smov %s587_s15  ;;  %15 = sbr.rel (!%p13_p7) target bundleno = 4 (0x4), region = 68 }
 0x1b0   :  { %279 = vsyncpa [#allocation3], 1 }
 0x1b1   :  { %281 = vsyncpa [#allocation3 + $0x1], 1 }
 0x1b2   :  { %282 = vsyncpa [#allocation4], 1 }
 0x1b3   :  { %284 = vsyncpa [#allocation4 + $0x1], 1 }

</bundles_post_ra>
